<compile_context>
chip_gen: v7x
topology: tpu7x:2x2x1
jax: 0.10.0
libtpu: 0.0.40
codegen_flags: <defaults>
</compile_context>

<pallas_src>
import functools
import math

import jax
import jax.numpy as jnp
from jax.experimental import pallas as pl
from jax.experimental.pallas import tpu as pltpu

LANE = 128                      # lane-dense slab last dim (full vreg lanes)
TARGET_BLOCK_BYTES = 2 << 20    # ~2 MiB per block buffer
_SUBLANE = {4: 8, 2: 16, 1: 32}  # sublane multiple per itemsize


def _i32const(x):
    """Python int with the two's-complement int32 value of a 32-bit constant."""
    x &= 0xFFFFFFFF
    return x - (1 << 32) if x >= (1 << 31) else x


_GOLDEN = _i32const(0x9E3779B9)
_MIX1 = _i32const(0x7FEB352D)
_MIX2 = _i32const(0x846CA68B)


def _lshr32(x, k):
    """Logical right shift on int32 vregs (arith shift + clear sign-extended bits)."""
    return (x >> k) & ((1 << (32 - k)) - 1)


def _dropout_kernel(keep_thr, block_rows, x_ref, seed_ref, o_ref):
    """out = x where hash(global_idx, seed) top-24-bits > keep_thr, else 0."""
    shape = x_ref.shape
    base = pl.program_id(0) * (block_rows * LANE)
    row = jax.lax.broadcasted_iota(jnp.int32, shape, 0)
    col = jax.lax.broadcasted_iota(jnp.int32, shape, 1)
    idx = base + row * LANE + col

    # Counter-based hash: mix seed, then lowbias32 avalanche (pure int32 VPU ops).
    h = idx * _GOLDEN + seed_ref[...]
    h = h ^ _lshr32(h, 16)
    h = h * _MIX1
    h = h ^ _lshr32(h, 15)
    h = h * _MIX2
    h = h ^ _lshr32(h, 16)
    r = _lshr32(h, 8)                      # uniform in [0, 2^24)

    # keep when u > p  <=>  r > floor(p * 2^24); no 1/(1-p) rescale (matches module).
    o_ref[...] = jnp.where(r > keep_thr, x_ref[...], jnp.zeros_like(x_ref[...]))


def _dropout_2d(x2, seed2, keep_thr, block_rows):
    n_rows, lane = x2.shape
    itemsize = jnp.dtype(x2.dtype).itemsize
    total = n_rows * lane
    cost = pl.CostEstimate(flops=16 * total, transcendentals=0,
                           bytes_accessed=2 * total * itemsize)
    return pl.pallas_call(
        functools.partial(_dropout_kernel, keep_thr, block_rows),
        out_shape=jax.ShapeDtypeStruct((n_rows, lane), x2.dtype),
        grid=(n_rows // block_rows,),
        in_specs=[pl.BlockSpec((block_rows, lane), lambda i: (i, 0)),
                  pl.BlockSpec((1, 1), lambda i: (0, 0))],
        out_specs=pl.BlockSpec((block_rows, lane), lambda i: (i, 0)),
        compiler_params=pltpu.CompilerParams(
            dimension_semantics=("parallel",)),   # v7x: shard steps over both TCs
        cost_estimate=cost,
    )(x2, seed2)


def _pick_block_rows(n_rows, sub, itemsize):
    """Largest sublane-multiple divisor of n_rows near the ~2 MiB target,
    keeping >= 2 (even) grid steps when possible (v7x dual TensorCore)."""
    target = max(sub, (TARGET_BLOCK_BYTES // (LANE * itemsize)) // sub * sub)
    br = max(sub, (min(target, n_rows) // sub) * sub)
    while n_rows % br:
        br -= sub
    g = n_rows // br
    if g % 2 == 1 and br % (2 * sub) == 0:
        br //= 2
    return br


@functools.partial(jax.jit, static_argnames=("dropout_prob",))
def attention_dropout(scores, seed, *, dropout_prob):
    """AttentionDropout.forward: scores * (rand_like(scores) > p).float()."""
    orig_shape = scores.shape
    total = math.prod(orig_shape) if orig_shape else 1
    if total == 0:
        return scores
    itemsize = jnp.dtype(scores.dtype).itemsize
    sub = _SUBLANE.get(itemsize, 8)
    keep_thr = min(int(math.floor(float(dropout_prob) * (1 << 24))), 1 << 24)
    seed2 = jnp.asarray(seed, jnp.int32).reshape(1, 1)

    if total % LANE == 0 and (total // LANE) % sub == 0:
        # Fast path (normal attention case): free reshape to a lane-dense slab.
        n_rows = total // LANE
        br = _pick_block_rows(n_rows, sub, itemsize)
        out2 = _dropout_2d(scores.reshape(n_rows, LANE), seed2, keep_thr, br)
        return out2.reshape(orig_shape)

    # Ragged fallback: pad to a full (rows, 128) slab (extra HBM pass; rare).
    n_rows = -(-total // LANE)
    target = max(sub, (TARGET_BLOCK_BYTES // (LANE * itemsize)) // sub * sub)
    br = max(sub, (min(target, ((n_rows + sub - 1) // sub) * sub) // sub) * sub)
    n_rows_pad = ((n_rows + br - 1) // br) * br
    flat = jnp.pad(scores.reshape(-1), (0, n_rows_pad * LANE - total))
    out2 = _dropout_2d(flat.reshape(n_rows_pad, LANE), seed2, keep_thr, br)
    return out2.reshape(-1)[:total].reshape(orig_shape)


if __name__ == "__main__":
    key = jax.random.PRNGKey(0)
    k1, k2, k3 = jax.random.split(key, 3)

    # Small attention-score tensor: (batch=2, heads=4, q_len=16, k_len=16).
    scores_small = jax.random.normal(k1, (2, 4, 16, 16), jnp.float32)
    # Larger tensor to exercise the multi-step pipelined grid.
    scores_big = jax.random.normal(k2, (8, 8, 128, 128), jnp.float32)
    # Ragged tensor to exercise the padded fallback path.
    scores_ragged = jax.random.normal(k3, (3, 5, 7), jnp.float32)

    p = 0.2
    out_small = attention_dropout(scores_small, 1234, dropout_prob=p)
    out_big = attention_dropout(scores_big, 1234, dropout_prob=p)
    out_big2 = attention_dropout(scores_big, 1234, dropout_prob=p)   # determinism
    out_rag = attention_dropout(scores_ragged, 7, dropout_prob=p)
    out_p0 = attention_dropout(scores_small, 7, dropout_prob=0.0)    # ~identity
    jax.block_until_ready((out_small, out_big, out_big2, out_rag, out_p0))

    # ---- self checks (no torch reference: RNG streams differ by design) -----
    for x, y in ((scores_small, out_small), (scores_big, out_big),
                 (scores_ragged, out_rag)):
        assert y.shape == x.shape and y.dtype == x.dtype
        # every output element is either the input value (kept) or exactly zero
        assert bool(jnp.all((y == x) | (y == 0.0)))
    keep_small = float(jnp.mean((out_small == scores_small).astype(jnp.float32)))
    keep_big = float(jnp.mean((out_big == scores_big).astype(jnp.float32)))
    assert abs(keep_small - (1.0 - p)) < 0.05, keep_small
    assert abs(keep_big - (1.0 - p)) < 0.03, keep_big
    # deterministic for a fixed seed (and independent of block decomposition)
    assert bool(jnp.all(out_big == out_big2))
    # p = 0 keeps (essentially) everything, matching torch.rand > 0 semantics
    assert float(jnp.mean((out_p0 == scores_small).astype(jnp.float32))) > 0.999

    print("KERNEL_OK")
</pallas_src>

<mosaic_0001>
module attributes {stable_mosaic.version = 11 : i64} {
  func.func @_dropout_kernel(%arg0: i32, %arg1: memref<8x128xf32, #tpu.memory_space<vmem>>, %arg2: memref<1x1xi32, #tpu.memory_space<vmem>>, %arg3: memref<8x128xf32, #tpu.memory_space<vmem>>) attributes {dimension_semantics = [#tpu.dimension_semantics<parallel>], iteration_bounds = array<i64: 2>, scalar_prefetch = 0 : i64, scratch_operands = 0 : i64, tpu.core_type = #tpu.core_type<tc>, window_params = [{transform_indices = @transform_0, window_bounds = array<i64: 8, 128>}, {pipeline_mode = #tpu.pipeline_mode<synchronous>, transform_indices = @transform_1, window_bounds = array<i64: 1, 1>}, {transform_indices = @transform_2, window_bounds = array<i64: 8, 128>}]} {
    %c1024_i32 = arith.constant 1024 : i32
    %0 = arith.muli %arg0, %c1024_i32 : i32
    %1 = tpu.iota {dimensions = array<i32: 0>} : vector<8x128xi32>
    %2 = tpu.iota {dimensions = array<i32: 1>} : vector<8x128xi32>
    %c128_i32 = arith.constant 128 : i32
    %3 = vector.broadcast %c128_i32 : i32 to vector<8x128xi32>
    %4 = arith.muli %1, %3 : vector<8x128xi32>
    %5 = vector.broadcast %0 : i32 to vector<8x128xi32>
    %6 = arith.addi %5, %4 : vector<8x128xi32>
    %7 = arith.addi %6, %2 : vector<8x128xi32>
    %c-1640531527_i32 = arith.constant -1640531527 : i32
    %8 = vector.broadcast %c-1640531527_i32 : i32 to vector<8x128xi32>
    %9 = arith.muli %7, %8 : vector<8x128xi32>
    %c0 = arith.constant 0 : index
    %c0_0 = arith.constant 0 : index
    %10 = vector.load %arg2[%c0, %c0_0] : memref<1x1xi32, #tpu.memory_space<vmem>>, vector<1x1xi32>
    %11 = vector.broadcast %10 : vector<1x1xi32> to vector<8x128xi32>
    %12 = arith.addi %9, %11 : vector<8x128xi32>
    %c16_i32 = arith.constant 16 : i32
    %13 = vector.broadcast %c16_i32 : i32 to vector<8x128xi32>
    %14 = arith.shrsi %12, %13 : vector<8x128xi32>
    %c65535_i32 = arith.constant 65535 : i32
    %15 = vector.broadcast %c65535_i32 : i32 to vector<8x128xi32>
    %16 = arith.andi %14, %15 : vector<8x128xi32>
    %17 = arith.xori %12, %16 : vector<8x128xi32>
    %c2146121005_i32 = arith.constant 2146121005 : i32
    %18 = vector.broadcast %c2146121005_i32 : i32 to vector<8x128xi32>
    %19 = arith.muli %17, %18 : vector<8x128xi32>
    %c15_i32 = arith.constant 15 : i32
    %20 = vector.broadcast %c15_i32 : i32 to vector<8x128xi32>
    %21 = arith.shrsi %19, %20 : vector<8x128xi32>
    %c131071_i32 = arith.constant 131071 : i32
    %22 = vector.broadcast %c131071_i32 : i32 to vector<8x128xi32>
    %23 = arith.andi %21, %22 : vector<8x128xi32>
    %24 = arith.xori %19, %23 : vector<8x128xi32>
    %c-2073254261_i32 = arith.constant -2073254261 : i32
    %25 = vector.broadcast %c-2073254261_i32 : i32 to vector<8x128xi32>
    %26 = arith.muli %24, %25 : vector<8x128xi32>
    %c16_i32_1 = arith.constant 16 : i32
    %27 = vector.broadcast %c16_i32_1 : i32 to vector<8x128xi32>
    %28 = arith.shrsi %26, %27 : vector<8x128xi32>
    %c65535_i32_2 = arith.constant 65535 : i32
    %29 = vector.broadcast %c65535_i32_2 : i32 to vector<8x128xi32>
    %30 = arith.andi %28, %29 : vector<8x128xi32>
    %31 = arith.xori %26, %30 : vector<8x128xi32>
    %c8_i32 = arith.constant 8 : i32
    %32 = vector.broadcast %c8_i32 : i32 to vector<8x128xi32>
    %33 = arith.shrsi %31, %32 : vector<8x128xi32>
    %c16777215_i32 = arith.constant 16777215 : i32
    %34 = vector.broadcast %c16777215_i32 : i32 to vector<8x128xi32>
    %35 = arith.andi %33, %34 : vector<8x128xi32>
    %c3355443_i32 = arith.constant 3355443 : i32
    %36 = vector.broadcast %c3355443_i32 : i32 to vector<8x128xi32>
    %37 = arith.cmpi sgt, %35, %36 : vector<8x128xi32>
    %c0_3 = arith.constant 0 : index
    %c0_4 = arith.constant 0 : index
    %38 = vector.load %arg1[%c0_3, %c0_4] : memref<8x128xf32, #tpu.memory_space<vmem>>, vector<8x128xf32>
    %cst = arith.constant 0.000000e+00 : f32
    %39 = vector.broadcast %cst : f32 to vector<8x128xf32>
    %40 = arith.select %37, %38, %39 : vector<8x128xi1>, vector<8x128xf32>
    %c0_5 = arith.constant 0 : index
    %c0_6 = arith.constant 0 : index
    %41 = vector.load %arg3[%c0_5, %c0_6] : memref<8x128xf32, #tpu.memory_space<vmem>>, vector<8x128xf32>
    tpu.vector_store %arg3[%c0_5, %c0_6], %40 {strides = array<i32>} : memref<8x128xf32, #tpu.memory_space<vmem>>, vector<8x128xf32>,
    return
  }
  func.func @transform_0(%arg0: i32) -> (i32, i32) {
    %c0_i32 = arith.constant 0 : i32
    %c0_i32_0 = arith.constant 0 : i32
    return %arg0, %c0_i32 : i32, i32
  }
  func.func @transform_1(%arg0: i32) -> (i32, i32) {
    %c0_i32 = arith.constant 0 : i32
    %c0_i32_0 = arith.constant 0 : i32
    %c0_i32_1 = arith.constant 0 : i32
    return %c0_i32, %c0_i32_0 : i32, i32
  }
  func.func @transform_2(%arg0: i32) -> (i32, i32) {
    %c0_i32 = arith.constant 0 : i32
    %c0_i32_0 = arith.constant 0 : i32
    return %arg0, %c0_i32 : i32, i32
  }
}

</mosaic_0001>

<bundles_post_ra>
// kernel: attention_dropout.1
= control target key start
LH: loop header
LB: loop body
LE: loop exit
PB: predicated region body
PF: predicated region fallthrough
CT: control target
= control target key end

     0   :  { %s282_s11 = smov 0   ;;  %s299_s0 = inlined_call_operand.vmem [shape: f32[16,128], index: 0, kind: input, shape index: {}]   ;;  %s300_s1 = inlined_call_operand.<no memory space> [shape: s32[1,1], index: 1, kind: input, shape index: {}]   ;;  %s301_s2 = inlined_call_operand.vmem [shape: f32[16,128], index: 2, kind: output, shape index: {}]  }
   0x1   :  { %v7_v0 = vstv %s300_s1 }
   0x2   :  { %8 = vst [vmem:[#allocation2] sm:$0x1] %v7_v0 }
   0x3 LB: > { %s230_s12 = sadd.s32 4294967295, %s261_s11   ;;  %p234_p0 = scmp.ge.s32.totalorder %s261_s11, 1  ;;  %s261_s11 = sphi %s282_s11, %s14_s11  }
   0x4   : > { %p113_p1 = scmp.lt.s32.totalorder %s261_s11, 3 }
   0x6   : > { %p114_p2 = pnand %p234_p0, %p113_p1 }
   0x7   : > { %v263_v2 = vmov (!%p114_p2), 0   ;;  %v142_v3 = vlaneseq (!%p114_p2)  ;;  %s237_s1 = sshll.u32 (!%p114_p2), %s230_s12, 10  ;;  %p133_p3 = scmp.lt.s32.totalorder (!%p114_p2), %s230_s12, 1 }
   0x8   : > { %117 = sbr.rel (%p114_p2) target bundleno = 161 (0xa1), region = 28  ;;  %254 = vset.pattern.permute.xlu0 (!%p114_p2), %v263_v2  ;;  %v147_v6 = vstv (!%p114_p2), %s237_s1 }
   0x9   : > { %v238_v1 = vld [vmem:[#allocation2] ss:$0 sm:$0xff] (!%p114_p2)  ;;  %v143_v4 = vshrl.u32 (!%p114_p2), %v142_v3, 7  ;;  %v145_v7 = vand.u32 (!%p114_p2), 127, %v142_v3 }
   0xa   : > { %157 = vperm.xlu0 (!%p114_p2), %254, %v238_v1  }
   0xb   : > { %v146_v5 = vmul.u32 (!%p114_p2), 128, %v143_v4 }
   0xd   : > { %v148_v8 = vadd.s32 (!%p114_p2), %v147_v6, %v146_v5 }
   0xf   : > { %v149_v9 = vadd.s32 %v148_v8, %v145_v7  ;;  %s303_s12 = smov (!%p133_p3, %s230_s12), 1 }
  0x10   : > { %s235_s13 = sshll.u32 %s303_s12, 3 }
  0x11   : > { %v150_v10 = vmul.u32 2654435769, %v149_v9  ;;  %s136_s16 = scalar_lea.vmem %s299_s0, %s235_s13  ;;  %s140_s19 = scalar_lea.vmem %s301_s2, %s235_s13 }
  0x12   : > { %v174_v22 = vld [vmem:[%s136_s16] sm:$0xff] }
  0x89   : > { %v158_v11 = vpop.permute.xlu0 %157 }
  0x8a   : > { %v159_v12 = vadd.s32 %v158_v11, %v150_v10 }
  0x8c   : > { %v239_v13 = vshrl.u32 %v159_v12, 16 }
  0x8e   : > { %v162_v14 = vxor.u32 %v239_v13, %v159_v12 }
  0x90   : > { %v163_v15 = vmul.u32 2146121005, %v162_v14 }
  0x92   : > { %v240_v16 = vshrl.u32 %v163_v15, 15 }
  0x94   : > { %v166_v17 = vxor.u32 %v240_v16, %v163_v15 }
  0x96   : > { %v167_v18 = vmul.u32 2221713035, %v166_v17 }
  0x98   : > { %v241_v19 = vshrl.u32 %v167_v18, 16 }
  0x9a   : > { %v170_v20 = vxor.u32 %v241_v19, %v167_v18 }
  0x9c   : > { %v242_v21 = vshrl.u32 %v170_v20, 8 }
  0x9e   : > { %vm173_vm0 = vcmp.gt.s32.totalorder %v242_v21, 3355443 }
  0x9f   : > { %v175_v23 = vsel %vm173_vm0, %v174_v22, 0.0 }
  0xa0   : > { %176 = vst [vmem:[%s140_s19] sm:$0xff] %v175_v23 }
  0xa1 PF: > { %s14_s11 = sadd.s32 1, %s261_s11  }
  0xa2   : > { %p11_p4 = scmp.ge.s32.totalorder %s14_s11, 4  }
  0xa4   :  { %13 = sbr.rel (!%p11_p4) target bundleno = 3 (0x3), region = 58 }

</bundles_post_ra>
